<compile_context>
chip_gen: v5e
topology: v5e:2x2
jax: 0.10.0
libtpu: 0.0.40
codegen_flags: <defaults>
</compile_context>

<pallas_src>
import jax
import jax.numpy as jnp
import numpy as np
from jax.experimental import pallas as pl
from jax.experimental.pallas import tpu as pltpu


# ----------------------------------------------------------------------------
# Pallas kernel: full GNN forward for ONE graph (grid axis = graph id)
# ----------------------------------------------------------------------------
def gnn_kernel(xp_ref, adj_ref, sup_adj_ref, scatter_ref, is_sup_ref, pool_ref,
               wcat_ref, bcat_ref, wlin_ref, blin_ref, out_ref):
    f32 = jnp.float32
    bf16 = jnp.bfloat16

    x = xp_ref[0]                    # (Np, H) f32, features zero-padded to H cols
    adj = adj_ref[0]                 # (Np, Np) bf16 dense adjacency (dst, src) counts
    b_all = bcat_ref[...]            # (L, H) f32 GraphConv biases
    H = x.shape[1]
    num_layers = wcat_ref.shape[0]

    # --- SimpleConv('add', edge_weight=edge_mask), supernode rows only:
    #     x[supernode] = sum_{j->supernode} edge_mask[e] * x[j]
    x_b = x.astype(bf16)
    x2_sup = jnp.dot(sup_adj_ref[0], x_b, preferred_element_type=f32)            # (S, Hp)
    x2_rows = jnp.dot(scatter_ref[0], x2_sup.astype(bf16),
                      preferred_element_type=f32)                                # (Np, H)
    h = jnp.where(is_sup_ref[0] > 0.0, x2_rows, x)                               # f32 blend

    # --- 3 x GraphConv: lin_rel(sum_{j->i} h_j) + b + lin_root(h_i)
    #     (two bf16 MXU dots per layer; no lane-axis concat)
    for l in range(num_layers):
        w_full = wcat_ref[l]                      # (2H, H) bf16, rows [wr; ws]
        h_b = h.astype(bf16)                      # single bf16 shadow per layer
        agg = jnp.dot(adj, h_b, preferred_element_type=f32)                      # (Np, H)
        h = (jnp.dot(agg.astype(bf16), w_full[:H, :], preferred_element_type=f32)
             + jnp.dot(h_b, w_full[H:, :], preferred_element_type=f32)
             + b_all[l:l + 1, :])
        if l < num_layers - 1:
            h = jnp.maximum(h, 0.0)

    # --- global_mean_pool over this graph's (valid) nodes
    pooled = jnp.dot(pool_ref[0], h.astype(bf16), preferred_element_type=f32)    # (1, H)

    # --- F.dropout(p=0.5) in eval mode is the identity.
    # TODO(synk): training-mode dropout (pltpu.prng_seed / prng_random_bits) not implemented.

    # --- final Linear(H, C), weight padded lane-dense to (H, 128)
    logits = (jnp.dot(pooled.astype(bf16), wlin_ref[...], preferred_element_type=f32)
              + blin_ref[...])                                                    # (1, 128)

    # Lane/sublane-dense (8, 128) store; wrapper slices to (num_graphs, C).
    out_ref[0] = jnp.broadcast_to(logits, out_ref.shape[1:])


# ----------------------------------------------------------------------------
# Wrapper: builds per-graph dense operators (host side), packs weights, calls kernel
# ----------------------------------------------------------------------------
def gnn_forward(x, edge_index, supernode_mask, edge_mask, batch, params,
                num_graphs, max_supernodes_per_graph=8):
    N, F = x.shape
    (w1r, w1s, b1, w2r, w2s, b2, w3r, w3s, b3, wl, bl) = params
    H = int(w1r.shape[1])
    C = int(wl.shape[1])
    G = int(num_graphs)
    assert F <= H and C <= 128, "feature width must fit H, class width must fit 128"

    # ---- host-side graph bookkeeping (concrete inputs; PyG-style batching) ----
    batch_np = np.asarray(batch)
    src_np = np.asarray(edge_index[0])
    dst_np = np.asarray(edge_index[1])
    mask_np = np.asarray(supernode_mask).astype(bool)
    ew_np = np.asarray(edge_mask).astype(np.float32)

    assert (np.diff(batch_np) >= 0).all(), "batch must be sorted (contiguous graphs)"
    assert (batch_np[src_np] == batch_np[dst_np]).all(), \
        "per-graph tiling assumes intra-graph edges (PyG batching)"

    counts = np.bincount(batch_np, minlength=G).astype(np.int64)
    offsets = np.concatenate([[0], np.cumsum(counts)[:-1]]).astype(np.int64)
    Np = int(max(8, ((counts.max() + 7) // 8) * 8))         # padded nodes/graph (sublane x8)
    S = int(max(8, ((max_supernodes_per_graph + 7) // 8) * 8))

    sup_per_graph = np.bincount(batch_np[mask_np], minlength=G)
    assert sup_per_graph.max(initial=0) <= S, \
        f"graph has more than {S} supernodes; raise max_supernodes_per_graph"

    g_of = batch_np
    local = np.arange(N) - offsets[g_of]

    # supernode slot (rank) within its graph
    cum = np.cumsum(mask_np.astype(np.int64))
    before = cum - mask_np.astype(np.int64)                 # supernodes strictly before i
    slot = before - before[offsets][g_of]
    slot_safe = np.where(mask_np, slot, S)                  # spill non-supernodes to row S

    ge = g_of[src_np]
    src_l = local[src_np]
    dst_l = local[dst_np]

    # ---- per-graph dense operators --------------------------------------------
    xp3 = np.zeros((G, Np, H), np.float32)
    xp3[g_of, local, :F] = np.asarray(x, np.float32)

    adj3 = np.zeros((G, Np, Np), np.float32)                # A[g, i, j] = #edges j->i
    np.add.at(adj3, (ge, dst_l, src_l), 1.0)
    assert adj3.max(initial=0.0) <= 256.0, "edge multiplicity too large for bf16 adjacency"

    sup3 = np.zeros((G, S + 1, Np), np.float32)             # masked adjacency, supernode rows
    np.add.at(sup3, (ge, slot_safe[dst_np], src_l), ew_np)
    sup3 = sup3[:, :S, :]

    scat3 = np.zeros((G, Np, S + 1), np.float32)            # one-hot scatter back to node rows
    scat3[g_of, local, slot_safe] = mask_np.astype(np.float32)
    scat3 = scat3[:, :, :S]

    issup3 = np.zeros((G, Np, 1), np.float32)
    issup3[g_of, local, 0] = mask_np.astype(np.float32)

    pool3 = np.zeros((G, 1, Np), np.float32)                # row-normalized mean pool
    pool3[g_of, 0, local] = (1.0 / counts[g_of]).astype(np.float32)

    # ---- pack weights: per layer a (2H, H) fused [wr; ws] slab, bf16 ----------
    def pad_rows(a, rows):
        out = np.zeros((rows, a.shape[1]), np.float32)
        out[:a.shape[0]] = np.asarray(a, np.float32)
        return out

    w1f = np.concatenate([pad_rows(w1r, H), pad_rows(w1s, H)], axis=0)   # (2H, H)
    w2f = np.concatenate([np.asarray(w2r, np.float32), np.asarray(w2s, np.float32)], axis=0)
    w3f = np.concatenate([np.asarray(w3r, np.float32), np.asarray(w3s, np.float32)], axis=0)
    wcat = jnp.asarray(np.stack([w1f, w2f, w3f]), jnp.bfloat16)          # (3, 2H, H)
    bcat = jnp.asarray(np.stack([np.asarray(b1, np.float32)[0],
                                 np.asarray(b2, np.float32)[0],
                                 np.asarray(b3, np.float32)[0]]), jnp.float32)   # (3, H)

    wlin_np = np.zeros((H, 128), np.float32)                # lane-dense final Linear
    wlin_np[:, :C] = np.asarray(wl, np.float32)
    blin_np = np.zeros((1, 128), np.float32)
    blin_np[:, :C] = np.asarray(bl, np.float32)
    wlin = jnp.asarray(wlin_np, jnp.bfloat16)
    blin = jnp.asarray(blin_np, jnp.float32)

    operands = (
        jnp.asarray(xp3, jnp.float32),
        jnp.asarray(adj3, jnp.bfloat16),
        jnp.asarray(sup3, jnp.bfloat16),
        jnp.asarray(scat3, jnp.bfloat16),
        jnp.asarray(issup3, jnp.float32),
        jnp.asarray(pool3, jnp.bfloat16),
        wcat, bcat, wlin, blin,
    )

    # ---- pallas_call: grid over graphs, fully independent ("parallel") --------
    in_specs = [
        pl.BlockSpec((1, Np, H), lambda g: (g, 0, 0)),       # xp3
        pl.BlockSpec((1, Np, Np), lambda g: (g, 0, 0)),      # adj3
        pl.BlockSpec((1, S, Np), lambda g: (g, 0, 0)),       # sup3
        pl.BlockSpec((1, Np, S), lambda g: (g, 0, 0)),       # scat3
        pl.BlockSpec((1, Np, 1), lambda g: (g, 0, 0)),       # issup3
        pl.BlockSpec((1, 1, Np), lambda g: (g, 0, 0)),       # pool3
        pl.BlockSpec((3, 2 * H, H), lambda g: (0, 0, 0)),    # wcat (shared)
        pl.BlockSpec((3, H), lambda g: (0, 0)),              # bcat (shared)
        pl.BlockSpec((H, 128), lambda g: (0, 0)),            # wlin (shared)
        pl.BlockSpec((1, 128), lambda g: (0, 0)),            # blin (shared)
    ]
    out_specs = pl.BlockSpec((1, 8, 128), lambda g: (g, 0, 0))

    flops_per_graph = (
        2 * S * Np * H + 2 * Np * S * H                       # SimpleConv + scatter-back
        + 3 * (2 * Np * Np * H + 2 * 2 * Np * H * H)          # 3 GraphConv layers
        + 2 * Np * H                                          # mean pool
        + 2 * H * 128                                         # final linear (padded)
    )
    bytes_accessed = int(sum(int(o.size) * o.dtype.itemsize for o in operands)
                         + G * 8 * 128 * 4)

    out = pl.pallas_call(
        gnn_kernel,
        out_shape=jax.ShapeDtypeStruct((G, 8, 128), jnp.float32),
        grid_spec=pltpu.PrefetchScalarGridSpec(
            num_scalar_prefetch=0,
            grid=(G,),
            in_specs=in_specs,
            out_specs=out_specs),
        compiler_params=pltpu.CompilerParams(
            dimension_semantics=("parallel",),
            vmem_limit_bytes=32 * 1024 * 1024),
        cost_estimate=pl.CostEstimate(flops=int(G * flops_per_graph),
                                      transcendentals=0,
                                      bytes_accessed=bytes_accessed),
    )(*operands)

    return out[:, 0, :C]


# ----------------------------------------------------------------------------
# Pure-JAX f32 reference (edge-list scatter form) for verification
# ----------------------------------------------------------------------------
def gnn_reference(x, edge_index, supernode_mask, edge_mask, batch, params,
                  num_graphs):
    src, dst = edge_index[0], edge_index[1]
    N = x.shape[0]
    (w1r, w1s, b1, w2r, w2s, b2, w3r, w3s, b3, wl, bl) = params

    msg = x[src] * edge_mask.astype(x.dtype)[:, None]
    x2 = jax.ops.segment_sum(msg, dst, num_segments=N)
    x = jnp.where(supernode_mask[:, None], x2, x)

    def gc(h, wr, ws, b):
        agg = jax.ops.segment_sum(h[src], dst, num_segments=N)
        return agg @ wr + b + h @ ws

    h = jax.nn.relu(gc(x, w1r, w1s, b1))
    h = jax.nn.relu(gc(h, w2r, w2s, b2))
    h = gc(h, w3r, w3s, b3)

    onehot = (batch[None, :] == jnp.arange(num_graphs)[:, None]).astype(jnp.float32)
    pooled = (onehot @ h) / jnp.maximum(onehot.sum(axis=1, keepdims=True), 1.0)
    return pooled @ wl + bl


# ----------------------------------------------------------------------------
if __name__ == "__main__":
    key = jax.random.PRNGKey(0)

    # Small problem: 2 graphs x 8 nodes, 8 node features, hidden 32, 4 classes
    num_node_features = 8
    hidden_channels = 32
    num_classes = 4
    nodes_per_graph = 8
    num_graphs = 2
    N = num_graphs * nodes_per_graph
    E_per_graph = 20

    keys = jax.random.split(key, 16)

    # Node features
    x = jax.random.normal(keys[0], (N, num_node_features), jnp.float32)

    # Edges: random intra-graph edges
    src0 = jax.random.randint(keys[1], (E_per_graph,), 0, nodes_per_graph)
    dst0 = jax.random.randint(keys[2], (E_per_graph,), 0, nodes_per_graph)
    src1 = jax.random.randint(keys[3], (E_per_graph,), 0, nodes_per_graph) + nodes_per_graph
    dst1 = jax.random.randint(keys[4], (E_per_graph,), 0, nodes_per_graph) + nodes_per_graph
    edge_index = jnp.stack([jnp.concatenate([src0, src1]),
                            jnp.concatenate([dst0, dst1])]).astype(jnp.int32)

    edge_mask = jax.random.bernoulli(keys[5], 0.7, (2 * E_per_graph,))
    supernode_mask = jnp.zeros((N,), jnp.bool_).at[jnp.array([0, nodes_per_graph])].set(True)
    batch = jnp.repeat(jnp.arange(num_graphs, dtype=jnp.int32), nodes_per_graph)

    # Deterministic parameter init (shapes follow GraphConv/Linear in __init__).
    # Stored as (in, out) for row-vector matmul.
    def init_linear(k, fan_in, fan_out):
        kw, kb = jax.random.split(k)
        lim = 1.0 / np.sqrt(fan_in)
        w = jax.random.uniform(kw, (fan_in, fan_out), jnp.float32, -lim, lim)
        b = jax.random.uniform(kb, (1, fan_out), jnp.float32, -lim, lim)
        return w, b

    w1r, b1 = init_linear(keys[6], num_node_features, hidden_channels)
    w1s, _ = init_linear(keys[7], num_node_features, hidden_channels)   # lin_root: no bias
    w2r, b2 = init_linear(keys[8], hidden_channels, hidden_channels)
    w2s, _ = init_linear(keys[9], hidden_channels, hidden_channels)
    w3r, b3 = init_linear(keys[10], hidden_channels, hidden_channels)
    w3s, _ = init_linear(keys[11], hidden_channels, hidden_channels)
    wl, bl = init_linear(keys[12], hidden_channels, num_classes)

    params = (w1r, w1s, b1, w2r, w2s, b2, w3r, w3s, b3, wl, bl)

    out = gnn_forward(x, edge_index, supernode_mask, edge_mask, batch, params,
                      num_graphs)
    out = jax.block_until_ready(out)

    ref = gnn_reference(x, edge_index, supernode_mask, edge_mask, batch, params,
                        num_graphs)
    # Tolerance absorbs bf16 rounding of weights + activations + pooling through
    # 4 chained aggregations (all accumulation is f32 on the MXU).
    np.testing.assert_allclose(np.asarray(out), np.asarray(ref),
                               rtol=4e-2, atol=4e-2)
    print("KERNEL_OK")
</pallas_src>

<mosaic_0001>
module attributes {stable_mosaic.version = 11 : i64} {
  func.func @gnn_kernel(%arg0: i32, %arg1: memref<1x8x32xf32, #tpu.memory_space<vmem>>, %arg2: memref<1x8x8xbf16, #tpu.memory_space<vmem>>, %arg3: memref<1x8x8xbf16, #tpu.memory_space<vmem>>, %arg4: memref<1x8x8xbf16, #tpu.memory_space<vmem>>, %arg5: memref<1x8x1xf32, #tpu.memory_space<vmem>>, %arg6: memref<1x1x8xbf16, #tpu.memory_space<vmem>>, %arg7: memref<3x64x32xbf16, #tpu.memory_space<vmem>>, %arg8: memref<3x32xf32, #tpu.memory_space<vmem>>, %arg9: memref<32x128xbf16, #tpu.memory_space<vmem>>, %arg10: memref<1x128xf32, #tpu.memory_space<vmem>>, %arg11: memref<1x8x128xf32, #tpu.memory_space<vmem>>) attributes {dimension_semantics = [#tpu.dimension_semantics<parallel>], iteration_bounds = array<i64: 2>, scalar_prefetch = 0 : i64, scratch_operands = 0 : i64, tpu.core_type = #tpu.core_type<tc>, window_params = [{transform_indices = @transform_0, window_bounds = array<i64: 1, 8, 32>}, {transform_indices = @transform_1, window_bounds = array<i64: 1, 8, 8>}, {transform_indices = @transform_2, window_bounds = array<i64: 1, 8, 8>}, {transform_indices = @transform_3, window_bounds = array<i64: 1, 8, 8>}, {transform_indices = @transform_4, window_bounds = array<i64: 1, 8, 1>}, {transform_indices = @transform_5, window_bounds = array<i64: 1, 1, 8>}, {pipeline_mode = #tpu.pipeline_mode<synchronous>, transform_indices = @transform_6, window_bounds = array<i64: 3, 64, 32>}, {pipeline_mode = #tpu.pipeline_mode<synchronous>, transform_indices = @transform_7, window_bounds = array<i64: 3, 32>}, {pipeline_mode = #tpu.pipeline_mode<synchronous>, transform_indices = @transform_8, window_bounds = array<i64: 32, 128>}, {pipeline_mode = #tpu.pipeline_mode<synchronous>, transform_indices = @transform_9, window_bounds = array<i64: 1, 128>}, {transform_indices = @transform_10, window_bounds = array<i64: 1, 8, 128>}]} {
    %c0 = arith.constant 0 : index
    %c0_0 = arith.constant 0 : index
    %c0_1 = arith.constant 0 : index
    %0 = vector.load %arg1[%c0, %c0_0, %c0_1] : memref<1x8x32xf32, #tpu.memory_space<vmem>>, vector<1x8x32xf32>
    %1 = vector.shape_cast %0 : vector<1x8x32xf32> to vector<8x32xf32>
    %c0_2 = arith.constant 0 : index
    %c0_3 = arith.constant 0 : index
    %c0_4 = arith.constant 0 : index
    %2 = vector.load %arg2[%c0_2, %c0_3, %c0_4] : memref<1x8x8xbf16, #tpu.memory_space<vmem>>, vector<1x8x8xbf16>
    %3 = vector.shape_cast %2 : vector<1x8x8xbf16> to vector<8x8xbf16>
    %c0_5 = arith.constant 0 : index
    %c0_6 = arith.constant 0 : index
    %4 = vector.load %arg8[%c0_5, %c0_6] : memref<3x32xf32, #tpu.memory_space<vmem>>, vector<3x32xf32>
    %5 = arith.truncf %1 : vector<8x32xf32> to vector<8x32xbf16>
    %c0_7 = arith.constant 0 : index
    %c0_8 = arith.constant 0 : index
    %c0_9 = arith.constant 0 : index
    %6 = vector.load %arg3[%c0_7, %c0_8, %c0_9] : memref<1x8x8xbf16, #tpu.memory_space<vmem>>, vector<1x8x8xbf16>
    %7 = vector.shape_cast %6 : vector<1x8x8xbf16> to vector<8x8xbf16>
    %cst = arith.constant dense<0.000000e+00> : vector<8x32xf32>
    %8 = tpu.matmul %7, %5, %cst {dimension_numbers = #tpu.dot_dimension_numbers<[1], [0], [0], [1], [0, 0, 1, 1], [], []>} : vector<8x8xbf16>, vector<8x32xbf16>, vector<8x32xf32> -> vector<8x32xf32>
    %c0_10 = arith.constant 0 : index
    %c0_11 = arith.constant 0 : index
    %c0_12 = arith.constant 0 : index
    %9 = vector.load %arg4[%c0_10, %c0_11, %c0_12] : memref<1x8x8xbf16, #tpu.memory_space<vmem>>, vector<1x8x8xbf16>
    %10 = vector.shape_cast %9 : vector<1x8x8xbf16> to vector<8x8xbf16>
    %11 = arith.truncf %8 : vector<8x32xf32> to vector<8x32xbf16>
    %cst_13 = arith.constant dense<0.000000e+00> : vector<8x32xf32>
    %12 = tpu.matmul %10, %11, %cst_13 {dimension_numbers = #tpu.dot_dimension_numbers<[1], [0], [0], [1], [0, 0, 1, 1], [], []>} : vector<8x8xbf16>, vector<8x32xbf16>, vector<8x32xf32> -> vector<8x32xf32>
    %c0_14 = arith.constant 0 : index
    %c0_15 = arith.constant 0 : index
    %c0_16 = arith.constant 0 : index
    %13 = vector.load %arg5[%c0_14, %c0_15, %c0_16] : memref<1x8x1xf32, #tpu.memory_space<vmem>>, vector<1x8x1xf32>
    %14 = vector.shape_cast %13 : vector<1x8x1xf32> to vector<8x1xf32>
    %cst_17 = arith.constant 0.000000e+00 : f32
    %15 = vector.broadcast %cst_17 : f32 to vector<8x1xf32>
    %16 = arith.cmpf ogt, %14, %15 : vector<8x1xf32>
    %17 = vector.shape_cast %16 : vector<8x1xi1> to vector<8x1xi1>
    %18 = vector.broadcast %17 : vector<8x1xi1> to vector<8x32xi1>
    %19 = arith.select %18, %12, %1 : vector<8x32xi1>, vector<8x32xf32>
    %c0_18 = arith.constant 0 : index
    %c0_19 = arith.constant 0 : index
    %c0_20 = arith.constant 0 : index
    %20 = vector.load %arg7[%c0_18, %c0_19, %c0_20] : memref<3x64x32xbf16, #tpu.memory_space<vmem>>, vector<1x64x32xbf16>
    %21 = vector.shape_cast %20 : vector<1x64x32xbf16> to vector<64x32xbf16>
    %22 = arith.truncf %19 : vector<8x32xf32> to vector<8x32xbf16>
    %cst_21 = arith.constant dense<0.000000e+00> : vector<8x32xf32>
    %23 = tpu.matmul %3, %22, %cst_21 {dimension_numbers = #tpu.dot_dimension_numbers<[1], [0], [0], [1], [0, 0, 1, 1], [], []>} : vector<8x8xbf16>, vector<8x32xbf16>, vector<8x32xf32> -> vector<8x32xf32>
    %24 = arith.truncf %23 : vector<8x32xf32> to vector<8x32xbf16>
    %25 = vector.extract_strided_slice %21 {offsets = [0, 0], sizes = [32, 32], strides = [1, 1]} : vector<64x32xbf16> to vector<32x32xbf16>
    %cst_22 = arith.constant dense<0.000000e+00> : vector<8x32xf32>
    %26 = tpu.matmul %24, %25, %cst_22 {dimension_numbers = #tpu.dot_dimension_numbers<[1], [0], [0], [1], [0, 0, 1, 1], [], []>} : vector<8x32xbf16>, vector<32x32xbf16>, vector<8x32xf32> -> vector<8x32xf32>
    %27 = vector.extract_strided_slice %21 {offsets = [32, 0], sizes = [32, 32], strides = [1, 1]} : vector<64x32xbf16> to vector<32x32xbf16>
    %cst_23 = arith.constant dense<0.000000e+00> : vector<8x32xf32>
    %28 = tpu.matmul %22, %27, %cst_23 {dimension_numbers = #tpu.dot_dimension_numbers<[1], [0], [0], [1], [0, 0, 1, 1], [], []>} : vector<8x32xbf16>, vector<32x32xbf16>, vector<8x32xf32> -> vector<8x32xf32>
    %29 = arith.addf %26, %28 : vector<8x32xf32>
    %30 = vector.extract_strided_slice %4 {offsets = [0, 0], sizes = [1, 32], strides = [1, 1]} : vector<3x32xf32> to vector<1x32xf32>
    %31 = vector.broadcast %30 : vector<1x32xf32> to vector<8x32xf32>
    %32 = arith.addf %29, %31 : vector<8x32xf32>
    %cst_24 = arith.constant 0.000000e+00 : f32
    %33 = vector.broadcast %cst_24 : f32 to vector<8x32xf32>
    %34 = arith.maximumf %32, %33 : vector<8x32xf32>
    %c1 = arith.constant 1 : index
    %c0_25 = arith.constant 0 : index
    %c0_26 = arith.constant 0 : index
    %35 = vector.load %arg7[%c1, %c0_25, %c0_26] : memref<3x64x32xbf16, #tpu.memory_space<vmem>>, vector<1x64x32xbf16>
    %36 = vector.shape_cast %35 : vector<1x64x32xbf16> to vector<64x32xbf16>
    %37 = arith.truncf %34 : vector<8x32xf32> to vector<8x32xbf16>
    %cst_27 = arith.constant dense<0.000000e+00> : vector<8x32xf32>
    %38 = tpu.matmul %3, %37, %cst_27 {dimension_numbers = #tpu.dot_dimension_numbers<[1], [0], [0], [1], [0, 0, 1, 1], [], []>} : vector<8x8xbf16>, vector<8x32xbf16>, vector<8x32xf32> -> vector<8x32xf32>
    %39 = arith.truncf %38 : vector<8x32xf32> to vector<8x32xbf16>
    %40 = vector.extract_strided_slice %36 {offsets = [0, 0], sizes = [32, 32], strides = [1, 1]} : vector<64x32xbf16> to vector<32x32xbf16>
    %cst_28 = arith.constant dense<0.000000e+00> : vector<8x32xf32>
    %41 = tpu.matmul %39, %40, %cst_28 {dimension_numbers = #tpu.dot_dimension_numbers<[1], [0], [0], [1], [0, 0, 1, 1], [], []>} : vector<8x32xbf16>, vector<32x32xbf16>, vector<8x32xf32> -> vector<8x32xf32>
    %42 = vector.extract_strided_slice %36 {offsets = [32, 0], sizes = [32, 32], strides = [1, 1]} : vector<64x32xbf16> to vector<32x32xbf16>
    %cst_29 = arith.constant dense<0.000000e+00> : vector<8x32xf32>
    %43 = tpu.matmul %37, %42, %cst_29 {dimension_numbers = #tpu.dot_dimension_numbers<[1], [0], [0], [1], [0, 0, 1, 1], [], []>} : vector<8x32xbf16>, vector<32x32xbf16>, vector<8x32xf32> -> vector<8x32xf32>
    %44 = arith.addf %41, %43 : vector<8x32xf32>
    %45 = vector.extract_strided_slice %4 {offsets = [1, 0], sizes = [1, 32], strides = [1, 1]} : vector<3x32xf32> to vector<1x32xf32>
    %46 = vector.broadcast %45 : vector<1x32xf32> to vector<8x32xf32>
    %47 = arith.addf %44, %46 : vector<8x32xf32>
    %cst_30 = arith.constant 0.000000e+00 : f32
    %48 = vector.broadcast %cst_30 : f32 to vector<8x32xf32>
    %49 = arith.maximumf %47, %48 : vector<8x32xf32>
    %c2 = arith.constant 2 : index
    %c0_31 = arith.constant 0 : index
    %c0_32 = arith.constant 0 : index
    %50 = vector.load %arg7[%c2, %c0_31, %c0_32] : memref<3x64x32xbf16, #tpu.memory_space<vmem>>, vector<1x64x32xbf16>
    %51 = vector.shape_cast %50 : vector<1x64x32xbf16> to vector<64x32xbf16>
    %52 = arith.truncf %49 : vector<8x32xf32> to vector<8x32xbf16>
    %cst_33 = arith.constant dense<0.000000e+00> : vector<8x32xf32>
    %53 = tpu.matmul %3, %52, %cst_33 {dimension_numbers = #tpu.dot_dimension_numbers<[1], [0], [0], [1], [0, 0, 1, 1], [], []>} : vector<8x8xbf16>, vector<8x32xbf16>, vector<8x32xf32> -> vector<8x32xf32>
    %54 = arith.truncf %53 : vector<8x32xf32> to vector<8x32xbf16>
    %55 = vector.extract_strided_slice %51 {offsets = [0, 0], sizes = [32, 32], strides = [1, 1]} : vector<64x32xbf16> to vector<32x32xbf16>
    %cst_34 = arith.constant dense<0.000000e+00> : vector<8x32xf32>
    %56 = tpu.matmul %54, %55, %cst_34 {dimension_numbers = #tpu.dot_dimension_numbers<[1], [0], [0], [1], [0, 0, 1, 1], [], []>} : vector<8x32xbf16>, vector<32x32xbf16>, vector<8x32xf32> -> vector<8x32xf32>
    %57 = vector.extract_strided_slice %51 {offsets = [32, 0], sizes = [32, 32], strides = [1, 1]} : vector<64x32xbf16> to vector<32x32xbf16>
    %cst_35 = arith.constant dense<0.000000e+00> : vector<8x32xf32>
    %58 = tpu.matmul %52, %57, %cst_35 {dimension_numbers = #tpu.dot_dimension_numbers<[1], [0], [0], [1], [0, 0, 1, 1], [], []>} : vector<8x32xbf16>, vector<32x32xbf16>, vector<8x32xf32> -> vector<8x32xf32>
    %59 = arith.addf %56, %58 : vector<8x32xf32>
    %60 = vector.extract_strided_slice %4 {offsets = [2, 0], sizes = [1, 32], strides = [1, 1]} : vector<3x32xf32> to vector<1x32xf32>
    %61 = vector.broadcast %60 : vector<1x32xf32> to vector<8x32xf32>
    %62 = arith.addf %59, %61 : vector<8x32xf32>
    %c0_36 = arith.constant 0 : index
    %c0_37 = arith.constant 0 : index
    %c0_38 = arith.constant 0 : index
    %63 = vector.load %arg6[%c0_36, %c0_37, %c0_38] : memref<1x1x8xbf16, #tpu.memory_space<vmem>>, vector<1x1x8xbf16>
    %64 = vector.shape_cast %63 : vector<1x1x8xbf16> to vector<1x8xbf16>
    %65 = arith.truncf %62 : vector<8x32xf32> to vector<8x32xbf16>
    %cst_39 = arith.constant dense<0.000000e+00> : vector<1x32xf32>
    %66 = tpu.matmul %64, %65, %cst_39 {dimension_numbers = #tpu.dot_dimension_numbers<[1], [0], [0], [1], [0, 0, 1, 1], [], []>} : vector<1x8xbf16>, vector<8x32xbf16>, vector<1x32xf32> -> vector<1x32xf32>
    %67 = arith.truncf %66 : vector<1x32xf32> to vector<1x32xbf16>
    %c0_40 = arith.constant 0 : index
    %c0_41 = arith.constant 0 : index
    %68 = vector.load %arg9[%c0_40, %c0_41] : memref<32x128xbf16, #tpu.memory_space<vmem>>, vector<32x128xbf16>
    %cst_42 = arith.constant dense<0.000000e+00> : vector<1x128xf32>
    %69 = tpu.matmul %67, %68, %cst_42 {dimension_numbers = #tpu.dot_dimension_numbers<[1], [0], [0], [1], [0, 0, 1, 1], [], []>} : vector<1x32xbf16>, vector<32x128xbf16>, vector<1x128xf32> -> vector<1x128xf32>
    %c0_43 = arith.constant 0 : index
    %c0_44 = arith.constant 0 : index
    %70 = vector.load %arg10[%c0_43, %c0_44] : memref<1x128xf32, #tpu.memory_space<vmem>>, vector<1x128xf32>
    %71 = arith.addf %69, %70 : vector<1x128xf32>
    %72 = vector.shape_cast %71 : vector<1x128xf32> to vector<1x128xf32>
    %73 = vector.broadcast %72 : vector<1x128xf32> to vector<8x128xf32>
    %c0_45 = arith.constant 0 : index
    %c0_46 = arith.constant 0 : index
    %c0_47 = arith.constant 0 : index
    %74 = vector.load %arg11[%c0_45, %c0_46, %c0_47] : memref<1x8x128xf32, #tpu.memory_space<vmem>>, vector<1x8x128xf32>
    %75 = vector.shape_cast %74 : vector<1x8x128xf32> to vector<8x128xf32>
    %76 = vector.shape_cast %73 : vector<8x128xf32> to vector<1x8x128xf32>
    tpu.vector_store %arg11[%c0_45, %c0_46, %c0_47], %76 {strides = array<i32>} : memref<1x8x128xf32, #tpu.memory_space<vmem>>, vector<1x8x128xf32>,
    return
  }
  func.func @transform_0(%arg0: i32) -> (i32, i32, i32) {
    %c0_i32 = arith.constant 0 : i32
    %c0_i32_0 = arith.constant 0 : i32
    %c0_i32_1 = arith.constant 0 : i32
    return %arg0, %c0_i32, %c0_i32_0 : i32, i32, i32
  }
  func.func @transform_1(%arg0: i32) -> (i32, i32, i32) {
    %c0_i32 = arith.constant 0 : i32
    %c0_i32_0 = arith.constant 0 : i32
    %c0_i32_1 = arith.constant 0 : i32
    return %arg0, %c0_i32, %c0_i32_0 : i32, i32, i32
  }
  func.func @transform_2(%arg0: i32) -> (i32, i32, i32) {
    %c0_i32 = arith.constant 0 : i32
    %c0_i32_0 = arith.constant 0 : i32
    %c0_i32_1 = arith.constant 0 : i32
    return %arg0, %c0_i32, %c0_i32_0 : i32, i32, i32
  }
  func.func @transform_3(%arg0: i32) -> (i32, i32, i32) {
    %c0_i32 = arith.constant 0 : i32
    %c0_i32_0 = arith.constant 0 : i32
    %c0_i32_1 = arith.constant 0 : i32
    return %arg0, %c0_i32, %c0_i32_0 : i32, i32, i32
  }
  func.func @transform_4(%arg0: i32) -> (i32, i32, i32) {
    %c0_i32 = arith.constant 0 : i32
    %c0_i32_0 = arith.constant 0 : i32
    %c0_i32_1 = arith.constant 0 : i32
    return %arg0, %c0_i32, %c0_i32_0 : i32, i32, i32
  }
  func.func @transform_5(%arg0: i32) -> (i32, i32, i32) {
    %c0_i32 = arith.constant 0 : i32
    %c0_i32_0 = arith.constant 0 : i32
    %c0_i32_1 = arith.constant 0 : i32
    return %arg0, %c0_i32, %c0_i32_0 : i32, i32, i32
  }
  func.func @transform_6(%arg0: i32) -> (i32, i32, i32) {
    %c0_i32 = arith.constant 0 : i32
    %c0_i32_0 = arith.constant 0 : i32
    %c0_i32_1 = arith.constant 0 : i32
    %c0_i32_2 = arith.constant 0 : i32
    return %c0_i32, %c0_i32_0, %c0_i32_1 : i32, i32, i32
  }
  func.func @transform_7(%arg0: i32) -> (i32, i32) {
    %c0_i32 = arith.constant 0 : i32
    %c0_i32_0 = arith.constant 0 : i32
    %c0_i32_1 = arith.constant 0 : i32
    return %c0_i32, %c0_i32_0 : i32, i32
  }
  func.func @transform_8(%arg0: i32) -> (i32, i32) {
    %c0_i32 = arith.constant 0 : i32
    %c0_i32_0 = arith.constant 0 : i32
    %c0_i32_1 = arith.constant 0 : i32
    return %c0_i32, %c0_i32_0 : i32, i32
  }
  func.func @transform_9(%arg0: i32) -> (i32, i32) {
    %c0_i32 = arith.constant 0 : i32
    %c0_i32_0 = arith.constant 0 : i32
    %c0_i32_1 = arith.constant 0 : i32
    return %c0_i32, %c0_i32_0 : i32, i32
  }
  func.func @transform_10(%arg0: i32) -> (i32, i32, i32) {
    %c0_i32 = arith.constant 0 : i32
    %c0_i32_0 = arith.constant 0 : i32
    %c0_i32_1 = arith.constant 0 : i32
    return %arg0, %c0_i32, %c0_i32_0 : i32, i32, i32
  }
}

</mosaic_0001>

<bundles_post_ra>
// kernel: tpu_custom_call.1
= control target key start
LH: loop header
LB: loop body
LE: loop exit
PB: predicated region body
PF: predicated region fallthrough
CT: control target
= control target key end

     0   :  { %s1390_s0 = inlined_call_operand.vmem [shape: f32[2,8,32], index: 0, kind: input, shape index: {}]   ;;  %s1391_s1 = inlined_call_operand.vmem [shape: bf16[2,8,8], index: 1, kind: input, shape index: {}]   ;;  %s1392_s2 = inlined_call_operand.vmem [shape: bf16[2,8,8], index: 2, kind: input, shape index: {}]   ;;  %s1393_s3 = inlined_call_operand.vmem [shape: bf16[2,8,8], index: 3, kind: input, shape index: {}]   ;;  %s1394_s4 = inlined_call_operand.vmem [shape: f32[2,8,1], index: 4, kind: input, shape index: {}]   ;;  %s1395_s5 = inlined_call_operand.vmem [shape: bf16[2,1,8], index: 5, kind: input, shape index: {}]   ;;  %s1396_s6 = inlined_call_operand.vmem [shape: bf16[3,64,32], index: 6, kind: input, shape index: {}]   ;;  %s1397_s7 = inlined_call_operand.vmem [shape: f32[3,32], index: 7, kind: input, shape index: {}]   ;;  %s1398_s8 = inlined_call_operand.vmem [shape: bf16[32,128], index: 8, kind: input, shape index: {}]   ;;  %s1399_s9 = inlined_call_operand.vmem [shape: f32[1,128], index: 9, kind: input, shape index: {}]   ;;  %s1400_s10 = inlined_call_operand.hbm [shape: f32[2,8,128], index: 10, kind: output, shape index: {}]  }
   0x1   :  { %1401 = sst [smem:[#allocation5_spill]] %s1390_s0 }
   0x2   :  { %1402 = sst [smem:[#allocation6_spill]] %s1391_s1 }
   0x3   :  { %15 = vsyncpa [#allocation3], 0 }
   0x4   :  { %17 = vsyncpa [#allocation3 + $0x1], 0  ;;  %s1213_s13 = smov 0   ;;  %s1215_s14 = smov 0  }
   0x5   :  { %s1217_s15 = smov 0   ;;  %s1219_s16 = smov 0  }
   0x6 LB: > { %s1234_s17 = sadd.s32 4294967295, %s1155_s16   ;;  %s939_s18 = sadd.s32 4294967294, %s1155_s16   ;;  %s1155_s16 = sphi %s1219_s16, %s1410_s16   ;;  %s1151_s15 = sphi %s1217_s15, %s1409_s15   ;;  %s1147_s14 = sphi %s1215_s14, %s1408_s14   ;;  %s1143_s13 = sphi %s1213_s13, %s1407_s13  }
   0x7   : > { %s1238_s19 = sadd.s32 1, %s1155_s16   ;;  %s270_s20 = sadd.s32 1, %s1151_s15 }
   0x8   : > { %s267_s21 = ssub.s32 %s1155_s16, %s1238_s19  ;;  %p280_p0 = scmp.ne.s32.totalorder %s1151_s15, %s1147_s14 }
   0x9   : > { %p268_p1 = scmp.eq.s32.totalorder %s267_s21, 0  ;;  %p281_p2 = scmp.eq.s32.totalorder %s1234_s17, 1 }
   0xa   : > { %p286_p3 = scmp.ne.s32.totalorder %s1147_s14, %s1143_s13  ;;  %p287_p4 = scmp.eq.s32.totalorder %s939_s18, 1 }
   0xb   : > { %s1249_s22 = scalar_select %p268_p1, %s1151_s15, %s270_s20  }
   0xc   : > { %p1251_p5 = por %p281_p2, %p280_p0  ;;  %p1255_p6 = por %p287_p4, %p286_p3 }
   0xd   : > { %p942_p7 = scmp.ge.s32.totalorder %s1155_s16, 1  ;;  %p358_p8 = scmp.lt.s32.totalorder %s1155_s16, 3 }
   0xf   : > { %p359_p9 = pnand %p942_p7, %p358_p8 }
  0x10   : > { %p414_p10 = scmp.lt.s32.totalorder (!%p359_p9), %s1234_s17, 1  ;;  %s1405_s0 = sld [smem:[#allocation5_spill]] (!%p359_p9) }
  0x11   : > { %362 = sbr.rel (%p359_p9) target bundleno = 1380 (0x564), region = 60  ;;  %s1406_s1 = sld [smem:[#allocation6_spill]] (!%p359_p9) }
  0x12   : > { %s1113_s12 = scalar_lea.hbm (!%p359_p9), %s1400_s10, 16 }
  0x16   : > { %s1263_s25 = scalar_select %p414_p10, %s1234_s17, 1  ;;  %vm447_vm0 = vcmask 1043456   ;;  %vm443_vm1 = vcmask 64512   ;;  %v1041_v5 = vld [vmem:[%s1396_s6 + $0x18] sm:$0xff]  ;;  %v1157_v6 = vmov 0   ;;  %v1040_v13 = vld [vmem:[%s1396_s6 + $0x10] sm:$0xff] }
  0x17   : > { %1092 = vset.pattern.permute.xlu0 %v1157_v6  ;;  %543 = vmatpush.bf16.msra.mxu3 %v1041_v5  ;;  %vm534_vm4 = vcmask 261120   ;;  %v1039_v21 = vld [vmem:[%s1396_s6 + $0x8] sm:$0xff]  ;;  %v1038_v22 = vld [vmem:[%s1396_s6] sm:$0xff]  ;;  %v1045_v28 = vld [vmem:[%s1396_s6 + $0x38] sm:$0xff] }
  0x18   : > { %s944_s26 = sshll.u32 %s1263_s25, 3  ;;  %s1267_s27 = sshll.u32 %s1263_s25, 2  ;;  %v1044_v29 = vld [vmem:[%s1396_s6 + $0x30] sm:$0xff]  ;;  %v1043_v30 = vld [vmem:[%s1396_s6 + $0x28] sm:$0xff]  ;;  %v440_v31 = vld [vmem:[%s1397_s7] sm:$0x7] }
  0x19   : > { %s417_s30 = scalar_lea.vmem %s1405_s0, %s944_s26  ;;  %s425_s18 = scalar_lea.vmem %s1392_s2, %s1267_s27  ;;  %v578_v32 = vperm.slane %v440_v31, 0  ;;  %v1042_v40 = vld [vmem:[%s1396_s6 + $0x20] sm:$0xff]  ;;  %v1049_v46 = vld [vmem:[%s1396_s6 + $0x58] sm:$0xff]  ;;  %v1048_v47 = vld [vmem:[%s1396_s6 + $0x50] sm:$0xff]  ;;  %v663_v48 = vperm.slane %v440_v31, 1 }
  0x1a   : > { %v438_v0 = vld [vmem:[%s417_s30] sm:$0xff]  ;;  %s433_s28 = scalar_lea.vmem %s1394_s4, %s944_s26  ;;  %s421_s29 = scalar_lea.vmem %s1406_s1, %s1267_s27  ;;  %v1047_v56 = vld [vmem:[%s1396_s6 + $0x48] sm:$0xff] }
  0x1b   : > { %v441_v1 = vpack.c.bf16 %v438_v0, %v438_v0  ;;  %v442_v3 = vld [vmem:[%s425_s18] sm:$0xf]  ;;  %s429_s18 = scalar_lea.vmem %s1393_s3, %s1267_s27  ;;  %544 = vmatpush.bf16.msra.mxu3 %v1040_v13  ;;  %v1051_v63 = vld [vmem:[%s1398_s8 + $0x8] sm:$0xff]  ;;  %s436_s20 = scalar_lea.vmem %s1395_s5, %s1263_s25 }
  0x1c   : > { %v485_v4 = vld [vmem:[%s433_s28] sm:$0xff]  ;;  %s1035_s25 = sshll.u32 %s1234_s17, 3 }
  0x1d   : > { %v449_v2 = vsel %vm447_vm0, %v441_v1, 0  ;;  %vm486_vm2 = vcmp.gt.f32.partialorder %v485_v4, 0.0  ;;  %v464_v11 = vld [vmem:[%s429_s18] sm:$0xf]  ;;  %s818_s18 = scalar_lea.hbm %s1400_s10, %s1035_s25 }
  0x1e   : > { %458 = vmatpush.bf16.msra.mxu0 %v449_v2  ;;  %v487_v7 = vsel %vm486_vm2, 1, %v1157_v6  ;;  %v439_v19 = vld [vmem:[%s421_s29] sm:$0xf]  ;;  %s411_s29 = sand.u32 1, %s1147_s14   ;;  %s822_s28 = sshll.u32 %s818_s18, 4  ;;  %s823_s28 = int_to_ptr.hbm [resolvable:$true] %s822_s28 }
  0x1f   : > { %489 = vperm.xlu0 %1092, %v487_v7   ;;  %656 = vmatpush.bf16.msrb.mxu3 %v1043_v30  ;;  %v1046_v57 = vld [vmem:[%s1396_s6 + $0x40] sm:$0xff]  ;;  %s943_s30 = sshll.u32 %s411_s29, 3  ;;  %s808_s0 = scalar_lea.sflag [#allocation3], %s411_s29 }
  0x20   : > { %v750_v7 = vld [vmem:[%s436_s20] sm:$0x1]  ;;  %s413_s20 = scalar_lea.vmem [#allocation2], %s943_s30  ;;  %s1107_s17 = sshra.s32 %s823_s28, 4  ;;  %s1108_s17 = int_to_ptr.hbm [resolvable:$true] %s1107_s17 }
  0x21   : > { %949 = vmatmul.msk.bf16.vlgmr.msra.gmra.mxu0 %vm443_vm1, %v442_v3  ;;  %s820_s21 = sshll.u32 %s413_s20, 4  ;;  %s1109_s1 = scalar_lea.hbm %s1108_s17, 8  ;;  %s821_s21 = int_to_ptr.vmem [resolvable:$true] %s820_s21 }
  0x22   : > { %571 = vmatpush.bf16.msrb.mxu0 %v1039_v21  ;;  %p1110_p11 = scmp.ne.s32.totalorder %s1108_s17, %s1109_s1  ;;  %p1114_p0 = scmp.lt.s32.totalorder %s1108_s17, %s1400_s10 }
  0x23   : > { %657 = vmatpush.bf16.msrb.mxu3 %v1042_v40  ;;  %p1115_p1 = scmp.lt.s32.totalorder %s1113_s12, %s1109_s1 }
  0x24   : > { %p1111_p12 = pnand %p1110_p11, %p1251_p5 }
  0x25   : > { %p1116_p2 = por %p1115_p1, %p1114_p0 }
  0x26   : > { %572 = vmatpush.bf16.msrb.mxu0 %v1038_v22  ;;  %p1112_p13 = pneg %p1111_p12 }
  0x28   : > { %p1117_p3 = pnand %p1116_p2, %p1112_p13 }
  0x91   : > { %v490_v14 = vpop.permute.xlu0 %489 }
  0x92   : > { %vm491_vm3 = vcmp.eq.s32.totalorder %v490_v14, 1 }
  0x9e   : > { %v460_v8 = vpop.f32.mrf.mxu0 }
  0x9f   : > { %v465_v9 = vpack.c.bf16 %v460_v8, %v460_v8  ;;  %v1050_v8 = vld [vmem:[%s1398_s8] sm:$0xff] }
  0xa1   : > { %v470_v10 = vsel %vm447_vm0, %v465_v9, 0 }
  0xa2   : > { %479 = vmatpush.bf16.msra.mxu1 %v470_v10 }
  0xa5   : > { %950 = vmatmul.msk.bf16.vlgmr.msra.gmra.mxu1 %vm443_vm1, %v464_v11 }
  0xa6   : > { %v462_v12 = vpop.f32.mrf.mxu0 }
  0xa7   : > { %v776_v12 = vld [vmem:[%s1399_s9] sm:$0x1] }
 0x122   : > { %v481_v15 = vpop.f32.mrf.mxu1 }
 0x123   : > { %v492_v16 = vsel %vm491_vm3, %v481_v15, %v438_v0  ;;  %v748_v0 = vperm.slane %v440_v31, 2 }
 0x124   : > { %v501_v17 = vpack.c.bf16 %v492_v16, %v492_v16 }
 0x126   : > { %960 = vmatmul.msk.bf16.vlgmr.msra.gmra.mxu3 %vm534_vm4, %v501_v17  ;;  %v506_v18 = vsel %vm447_vm0, %v501_v17, 0 }
 0x127   : > { %515 = vmatpush.bf16.msra.mxu2 %v506_v18 }
 0x12a   : > { %v483_v20 = vpop.f32.mrf.mxu1  ;;  %951 = vmatmul.msk.bf16.vlgmr.msra.gmra.mxu2 %vm443_vm1, %v439_v19 }
 0x12b   : > { %628 = vmatpush.bf16.msrb.mxu2 %v1045_v28 }
 0x12f   : > { %629 = vmatpush.bf16.msrb.mxu2 %v1044_v29 }
 0x133   : > { %741 = vmatpush.bf16.msra.mxu2 %v1047_v56 }
 0x137   : > { %742 = vmatpush.bf16.msra.mxu2 %v1046_v57 }
 0x1a9   : > { %v546_v23 = vpop.f32.mrf.mxu3 }
 0x1ad   : > { %v517_v24 = vpop.f32.mrf.mxu2 }
 0x1ae   : > { %v521_v25 = vpack.c.bf16 %v517_v24, %v517_v24 }
 0x1b0   : > { %969 = vmatmul.msk.bf16.vlgmr.msrb.gmra.mxu0 %vm534_vm4, %v521_v25 }
 0x1b1   : > { %v548_v26 = vpop.f32.mrf.mxu3 }
 0x1b5   : > { %v519_v27 = vpop.f32.mrf.mxu2 }
 0x22d   : > { %v574_v33 = vpop.f32.mrf.mxu0 }
 0x22e   : > { %v575_v34 = vadd.f32 %v574_v33, %v546_v23 }
 0x230   : > { %v579_v35 = vadd.f32 %v578_v32, %v575_v34 }
 0x232   : > { %v580_v36 = vmax.f32 %v579_v35, 0.0 }
 0x234   : > { %v590_v37 = vpack.c.bf16 %v580_v36, %v580_v36 }
 0x235   : > { %v576_v38 = vpop.f32.mrf.mxu0 }
 0x236   : > { %987 = vmatmul.msk.bf16.vlgmr.msrb.gmra.mxu2 %vm534_vm4, %v590_v37  ;;  %v592_v39 = vsel %vm447_vm0, %v590_v37, 0 }
 0x237   : > { %601 = vmatpush.bf16.msrb.mxu1 %v592_v39 }
 0x23a   : > { %978 = vmatmul.msk.bf16.vlgmr.msrb.gmra.mxu1 %vm443_vm1, %v439_v19 }
 0x23b   : > { %713 = vmatpush.bf16.msra.mxu1 %v1049_v46 }
 0x23f   : > { %714 = vmatpush.bf16.msra.mxu1 %v1048_v47 }
 0x2b7   : > { %v603_v41 = vpop.f32.mrf.mxu1 }
 0x2b8   : > { %v607_v42 = vpack.c.bf16 %v603_v41, %v603_v41 }
 0x2b9   : > { %v631_v43 = vpop.f32.mrf.mxu2 }
 0x2ba   : > { %996 = vmatmul.msk.bf16.vlgmr.msrb.gmra.mxu3 %vm534_vm4, %v607_v42 }
 0x2bf   : > { %v605_v44 = vpop.f32.mrf.mxu1 }
 0x2c1   : > { %v633_v45 = vpop.f32.mrf.mxu2 }
 0x33d   : > { %v659_v49 = vpop.f32.mrf.mxu3 }
 0x33e   : > { %v660_v50 = vadd.f32 %v659_v49, %v631_v43 }
 0x340   : > { %v664_v51 = vadd.f32 %v663_v48, %v660_v50 }
 0x342   : > { %v665_v52 = vmax.f32 %v664_v51, 0.0 }
 0x344   : > { %v675_v53 = vpack.c.bf16 %v665_v52, %v665_v52 }
 0x345   : > { %v661_v54 = vpop.f32.mrf.mxu3 }
 0x346   : > { %1014 = vmatmul.msk.bf16.vlgmr.msra.gmra.mxu1 %vm534_vm4, %v675_v53  ;;  %v677_v55 = vsel %vm447_vm0, %v675_v53, 0 }
 0x347   : > { %686 = vmatpush.bf16.msra.mxu0 %v677_v55 }
 0x34a   : > { %1005 = vmatmul.msk.bf16.vlgmr.msra.gmra.mxu0 %vm443_vm1, %v439_v19 }
 0x34b   : > { %798 = vmatpush.bf16.msrb.mxu0 %v1051_v63 }
 0x34f   : > { %799 = vmatpush.bf16.msrb.mxu0 %v1050_v8 }
 0x3c3   : > { %v716_v58 = vpop.f32.mrf.mxu1 }
 0x3c7   : > { %v688_v59 = vpop.f32.mrf.mxu0 }
 0x3c8   : > { %v692_v60 = vpack.c.bf16 %v688_v59, %v688_v59 }
 0x3ca   : > { %1023 = vmatmul.msk.bf16.vlgmr.msra.gmra.mxu2 %vm534_vm4, %v692_v60 }
 0x3cb   : > { %v718_v61 = vpop.f32.mrf.mxu1 }
 0x3cf   : > { %v690_v62 = vpop.f32.mrf.mxu0 }
 0x44d   : > { %v744_v1 = vpop.f32.mrf.mxu2 }
 0x44e   : > { %v745_v2 = vadd.f32 %v744_v1, %v716_v58 }
 0x450   : > { %v749_v3 = vadd.f32 %v748_v0, %v745_v2 }
 0x452   : > { %v751_v4 = vpack.c.bf16 %v749_v3, %v749_v3 }
 0x454   : > { %v756_v5 = vsel %vm447_vm0, %v751_v4, 0 }
 0x455   : > { %v746_v6 = vpop.f32.mrf.mxu2  ;;  %765 = vmatpush.bf16.msra.mxu3 %v756_v5 }
 0x458   : > { %1024 = vmatmul.msk.bf16.vlgmr.msra.gmra.mxu3 %vm443_vm1, %v750_v7 }
 0x4db   : > { %v767_v9 = vpop.f32.mrf.mxu3 }
 0x4dc   : > { %v771_v10 = vpack.c.bf16 %v767_v9, %v767_v9 }
 0x4de   : > { %1033 = vmatmul.msk.bf16.vlgmr.msrb.gmra.mxu0 %vm534_vm4, %v771_v10 }
 0x4e3   : > { %v769_v11 = vpop.f32.mrf.mxu3 }
 0x55b   : > { %v801_v13 = vpop.f32.mrf.mxu0 }
 0x55c   : > { %v802_v14 = vadd.f32 %v801_v13, %v776_v12 }
 0x55e   : > { %v805_v15 = vperm.slane %v802_v14, 0 }
 0x560   : > { %806 = vst [vmem:[%s413_s20] sm:$0xff] %v805_v15 }
 0x561   : > { %1120 = shalt.err (!%p1117_p3)
}
 0x562   : > { %1052 = dma.vmem_to_hbm [thread:$0]  (%p1251_p5), %s821_s21, 128, %s823_s28, %s808_s0  }
 0x563   : > { %v803_v16 = vpop.f32.mrf.mxu0 }
 0x564 PF: > { %p1058_p4 = scmp.ge.s32.totalorder %s1155_s16, 2  ;;  %s834_s29 = sand.u32 1, %s1143_s13  }
 0x565   : > { %s835_s18 = scalar_lea.sflag [#allocation3], %s834_s29 }
 0x566   : > { %p1055_p7 = pnand %p1058_p4, %p1255_p6 }
 0x568   : > { %p1056_p8 = pneg %p1055_p7 }
 0x56a   : > { %1138 = dma.done.wait (%p1056_p8), %s835_s18, 128  }
 0x56b   : > { %1140 = vsyncadd (%p1056_p8), %s835_s18, 4294967168  ;;  %p20_p9 = scmp.ge.s32.totalorder %s1238_s19, 4   ;;  %s1407_s13 = smov %s1147_s14 }
 0x56c   : > { %s1408_s14 = smov %s1151_s15  ;;  %s1409_s15 = smov %s1249_s22 }
 0x56d   : > { %s1410_s16 = smov %s1238_s19  ;;  %22 = sbr.rel (!%p20_p9) target bundleno = 6 (0x6), region = 112 }
 0x572   :  { %841 = vsyncpa [#allocation3], 1 }
 0x573   :  { %843 = vsyncpa [#allocation3 + $0x1], 1 }

</bundles_post_ra>
